<compile_context>
chip_gen: v7x
topology: tpu7x:2x2x1
jax: 0.10.0
libtpu: 0.0.40
codegen_flags: <defaults>
</compile_context>

<pallas_src>
import jax
import jax.numpy as jnp
from jax import lax
from jax.experimental import pallas as pl
from jax.experimental.pallas import tpu as pltpu

LN_EPS = 1e-5  # nn.LayerNorm default


def _round_up(a: int, b: int) -> int:
    return (a + b - 1) // b * b


def _ln_proj_kernel(x_ref, w_ref, b_ref, o_ref, xn_ref):
    """One (tm, tn) output tile of  Linear(LayerNorm(x)).

    x_ref : (tm, Din)   input rows (full feature dim per block)
    w_ref : (Din, tn)   folded weight  W' = gamma[:,None] * W^T   (bf16)
    b_ref : (1, tn)     folded bias    b' = beta @ W^T + b        (f32)
    o_ref : (tm, tn)    output tile
    xn_ref: (tm, Din)   VMEM scratch caching the normalized rows (bf16)
    """
    j = pl.program_id(1)

    # LayerNorm over the channel dim, computed once per row tile (j == 0) and
    # cached; j > 0 feature tiles reuse the cache (j axis is "arbitrary", so it
    # is iterated sequentially on one core and the cache is valid).
    @pl.when(j == 0)
    def _():
        x = x_ref[...].astype(jnp.float32)
        mean = jnp.mean(x, axis=-1, keepdims=True)
        centered = x - mean
        var = jnp.mean(centered * centered, axis=-1, keepdims=True)
        xn = centered * lax.rsqrt(var + LN_EPS)   # biased var + eps: matches PyTorch
        xn_ref[...] = xn.astype(xn_ref.dtype)

    # MXU matmul: bf16 operands, f32 accumulation. gamma/beta already folded in.
    acc = jnp.dot(xn_ref[...], w_ref[...], preferred_element_type=jnp.float32)
    o_ref[...] = (acc + b_ref[...]).astype(o_ref.dtype)


def prenorm_projection(x, gamma, beta, w, b=None, *,
                       tile_m=1024,            # HBM-bound: bigger row tiles win
                       tile_n=None,            # None -> whole Dout if small, else 256
                       mxu_dtype=jnp.bfloat16,
                       out_dtype=jnp.bfloat16,  # pass x.dtype to keep f32 output
                       vmem_limit_cap=48 << 20):  # < v7x's 64 MiB physical VMEM
    """Computes Linear(LayerNorm(x)) = LN_affine(x) @ w.T + b.

    x: (B, S, Din). gamma/beta: (Din,) LayerNorm affine. w: (Dout, Din)
    PyTorch Linear weight. b: optional (Dout,) bias. Returns (B, S, Dout).
    """
    B, S, Din = x.shape
    Dout, Din_w = w.shape
    assert Din_w == Din, "weight in-features must match channel dim"
    N = B * S

    # ---- fold the LayerNorm affine into the projection (once, on the tiny W) ----
    w_t = w.T.astype(jnp.float32)                                   # (Din, Dout)
    w_folded = (w_t * gamma.astype(jnp.float32)[:, None]).astype(mxu_dtype)
    b_folded = beta.astype(jnp.float32) @ w_t                       # (Dout,)
    if b is not None:
        b_folded = b_folded + b.astype(jnp.float32)
    b2 = b_folded.reshape(1, Dout)

    x2 = x.reshape(N, Din)   # no pad, no copy of the activation

    # ---- tile sizes ----
    if tile_n is None:
        # ImprovedOCET shapes (Dout <= ~256): keep the whole weight resident,
        # single feature block -> effectively a 1-D grid over row tiles and a
        # full-width MXU N-dim. Fall back to 256-wide tiles for large Dout
        # (v5e may prefer 128 there; pass tile_n=128 explicitly).
        tn = Dout if Dout <= 512 else 256
    else:
        tn = min(tile_n, Dout)
    tm = _round_up(min(tile_m, N), 8)

    # ---- explicit VMEM budget (double buffers counted once, no extra x2) ----
    isz_x = jnp.dtype(x2.dtype).itemsize
    isz_w = jnp.dtype(mxu_dtype).itemsize
    isz_o = jnp.dtype(out_dtype).itemsize

    def vmem_need(tm_):
        return (2 * tm_ * Din * isz_x           # x tiles (double-buffered)
                + 2 * Din * tn * isz_w          # folded weight tiles
                + 2 * tn * 4                    # folded bias tiles (f32)
                + 2 * tm_ * tn * isz_o          # output tiles
                + tm_ * Din * isz_w             # LN cache scratch
                + tm_ * Din * 4 + tm_ * tn * 4)  # f32 LN temps + accumulator

    while tm > 8 and vmem_need(tm) > (vmem_limit_cap * 4) // 5:
        tm = _round_up(max(tm // 2, 8), 8)
    vmem_limit = int(min(max(vmem_need(tm) * 5 // 4, 16 << 20), vmem_limit_cap))

    grid = (pl.cdiv(N, tm), pl.cdiv(Dout, tn))

    out2 = pl.pallas_call(
        _ln_proj_kernel,
        out_shape=jax.ShapeDtypeStruct((N, Dout), out_dtype),
        grid_spec=pltpu.PrefetchScalarGridSpec(
            num_scalar_prefetch=0,
            grid=grid,
            in_specs=[
                # x rows: block index constant over j -> revisited, no re-DMA.
                pl.BlockSpec((tm, Din), lambda i, j: (i, 0)),
                # folded weight column tile: constant over i (single fetch when
                # the feature axis collapses to one block).
                pl.BlockSpec((Din, tn), lambda i, j: (0, j)),
                # folded bias tile (tiny).
                pl.BlockSpec((1, tn), lambda i, j: (0, j)),
            ],
            out_specs=pl.BlockSpec((tm, tn), lambda i, j: (i, j)),
            scratch_shapes=[pltpu.VMEM((tm, Din), mxu_dtype)],  # LN cache
        ),
        compiler_params=pltpu.CompilerParams(
            # Only the row axis is megacore-sharded (v7x); the feature axis must
            # stay sequential per core for the LN cache to be valid.
            dimension_semantics=("parallel", "arbitrary"),
            vmem_limit_bytes=vmem_limit,
        ),
    )(x2, w_folded, b2)

    return out2.reshape(B, S, Dout)


def _reference(x, gamma, beta, w, b):
    xf = x.astype(jnp.float32)
    mean = jnp.mean(xf, axis=-1, keepdims=True)
    var = jnp.mean((xf - mean) ** 2, axis=-1, keepdims=True)
    y = (xf - mean) / jnp.sqrt(var + LN_EPS) * gamma + beta
    out = y @ w.T.astype(jnp.float32)
    if b is not None:
        out = out + b
    return out


if __name__ == "__main__":
    # Shapes implied by ImprovedOCET's transformer: the conv front-end emits 64
    # channels, so dim = 64. Keep batch / seq / heads small for the demo.
    B, S, dim = 2, 64, 64
    heads, dim_head = 2, 32
    inner_dim = heads * dim_head            # 64
    d_qkv = 3 * inner_dim                   # 192
    mlp_dim = 128

    key = jax.random.PRNGKey(0)
    kx, kg1, kb1, kw1, kg2, kb2, kw2, kbf = jax.random.split(key, 8)

    x = jax.random.normal(kx, (B, S, dim), dtype=jnp.float32)

    # ---- PreNorm -> Attention.to_qkv (bias=False) ----
    gamma1 = 1.0 + 0.01 * jax.random.normal(kg1, (dim,), jnp.float32)
    beta1 = 0.01 * jax.random.normal(kb1, (dim,), jnp.float32)
    w_qkv = jax.random.normal(kw1, (d_qkv, dim), jnp.float32) / jnp.sqrt(dim)

    out_qkv = jax.block_until_ready(prenorm_projection(x, gamma1, beta1, w_qkv))
    ref_qkv = _reference(x, gamma1, beta1, w_qkv, None)
    assert out_qkv.shape == (B, S, d_qkv)
    # bf16 MXU operands + bf16 output (f32 accumulation) vs f32 reference.
    assert jnp.allclose(out_qkv.astype(jnp.float32), ref_qkv,
                        atol=4e-2, rtol=4e-2), "to_qkv projection mismatch"

    # ---- PreNorm -> FeedForward first Linear (with bias) ----
    gamma2 = 1.0 + 0.01 * jax.random.normal(kg2, (dim,), jnp.float32)
    beta2 = 0.01 * jax.random.normal(kb2, (dim,), jnp.float32)
    w_ff = jax.random.normal(kw2, (mlp_dim, dim), jnp.float32) / jnp.sqrt(dim)
    b_ff = 0.1 * jax.random.normal(kbf, (mlp_dim,), jnp.float32)

    out_ff = jax.block_until_ready(prenorm_projection(x, gamma2, beta2, w_ff, b_ff))
    ref_ff = _reference(x, gamma2, beta2, w_ff, b_ff)
    assert out_ff.shape == (B, S, mlp_dim)
    assert jnp.allclose(out_ff.astype(jnp.float32), ref_ff,
                        atol=4e-2, rtol=4e-2), "feedforward projection mismatch"

    print("KERNEL_OK")
</pallas_src>

<mosaic_0001>
module attributes {stable_mosaic.version = 11 : i64} {
  func.func @_ln_proj_kernel(%arg0: i32, %arg1: i32, %arg2: memref<128x64xf32, #tpu.memory_space<vmem>>, %arg3: memref<64x192xbf16, #tpu.memory_space<vmem>>, %arg4: memref<1x192xf32, #tpu.memory_space<vmem>>, %arg5: memref<128x192xbf16, #tpu.memory_space<vmem>>, %arg6: memref<128x64xbf16, #tpu.memory_space<vmem>>) attributes {dimension_semantics = [#tpu.dimension_semantics<parallel>, #tpu.dimension_semantics<arbitrary>], iteration_bounds = array<i64: 1, 1>, scalar_prefetch = 0 : i64, scratch_operands = 1 : i64, tpu.core_type = #tpu.core_type<tc>, window_params = [{transform_indices = @transform_0, window_bounds = array<i64: 128, 64>}, {transform_indices = @transform_1, window_bounds = array<i64: 64, 192>}, {transform_indices = @transform_2, window_bounds = array<i64: 1, 192>}, {transform_indices = @transform_3, window_bounds = array<i64: 128, 192>}]} {
    %c0_i32 = arith.constant 0 : i32
    %0 = arith.cmpi eq, %arg1, %c0_i32 : i32
    %1 = arith.extui %0 : i1 to i32
    %c0_i32_0 = arith.constant 0 : i32
    %2 = arith.cmpi ne, %1, %c0_i32_0 : i32
    scf.if %2 {
      %c0_8 = arith.constant 0 : index
      %c0_9 = arith.constant 0 : index
      %11 = vector.load %arg2[%c0_8, %c0_9] : memref<128x64xf32, #tpu.memory_space<vmem>>, vector<128x64xf32>
      %cst_10 = arith.constant dense<0.000000e+00> : vector<128xf32>
      %12 = vector.multi_reduction <add>, %11, %cst_10 [1] : vector<128x64xf32> to vector<128xf32>
      %13 = vector.shape_cast %12 : vector<128xf32> to vector<128x1xf32>
      %cst_11 = arith.constant 6.400000e+01 : f32
      %14 = vector.broadcast %cst_11 : f32 to vector<128x1xf32>
      %15 = arith.divf %13, %14 : vector<128x1xf32>
      %16 = vector.broadcast %15 : vector<128x1xf32> to vector<128x64xf32>
      %17 = arith.subf %11, %16 : vector<128x64xf32>
      %18 = arith.mulf %17, %17 : vector<128x64xf32>
      %cst_12 = arith.constant dense<0.000000e+00> : vector<128xf32>
      %19 = vector.multi_reduction <add>, %18, %cst_12 [1] : vector<128x64xf32> to vector<128xf32>
      %20 = vector.shape_cast %19 : vector<128xf32> to vector<128x1xf32>
      %cst_13 = arith.constant 6.400000e+01 : f32
      %21 = vector.broadcast %cst_13 : f32 to vector<128x1xf32>
      %22 = arith.divf %20, %21 : vector<128x1xf32>
      %cst_14 = arith.constant 9.99999974E-6 : f32
      %23 = vector.broadcast %cst_14 : f32 to vector<128x1xf32>
      %24 = arith.addf %22, %23 : vector<128x1xf32>
      %25 = math.rsqrt %24 : vector<128x1xf32>
      %26 = vector.broadcast %25 : vector<128x1xf32> to vector<128x64xf32>
      %27 = arith.mulf %17, %26 : vector<128x64xf32>
      %28 = arith.truncf %27 : vector<128x64xf32> to vector<128x64xbf16>
      %c0_15 = arith.constant 0 : index
      %c0_16 = arith.constant 0 : index
      %29 = vector.load %arg6[%c0_15, %c0_16] : memref<128x64xbf16, #tpu.memory_space<vmem>>, vector<128x64xbf16>
      tpu.vector_store %arg6[%c0_15, %c0_16], %28 {strides = array<i32>} : memref<128x64xbf16, #tpu.memory_space<vmem>>, vector<128x64xbf16>,
    } else {
    }
    %c0 = arith.constant 0 : index
    %c0_1 = arith.constant 0 : index
    %3 = vector.load %arg6[%c0, %c0_1] : memref<128x64xbf16, #tpu.memory_space<vmem>>, vector<128x64xbf16>
    %c0_2 = arith.constant 0 : index
    %c0_3 = arith.constant 0 : index
    %4 = vector.load %arg3[%c0_2, %c0_3] : memref<64x192xbf16, #tpu.memory_space<vmem>>, vector<64x192xbf16>
    %cst = arith.constant dense<0.000000e+00> : vector<128x192xf32>
    %5 = tpu.matmul %3, %4, %cst {dimension_numbers = #tpu.dot_dimension_numbers<[1], [0], [0], [1], [0, 0, 1, 1], [], []>} : vector<128x64xbf16>, vector<64x192xbf16>, vector<128x192xf32> -> vector<128x192xf32>
    %c0_4 = arith.constant 0 : index
    %c0_5 = arith.constant 0 : index
    %6 = vector.load %arg4[%c0_4, %c0_5] : memref<1x192xf32, #tpu.memory_space<vmem>>, vector<1x192xf32>
    %7 = vector.broadcast %6 : vector<1x192xf32> to vector<128x192xf32>
    %8 = arith.addf %5, %7 : vector<128x192xf32>
    %9 = arith.truncf %8 : vector<128x192xf32> to vector<128x192xbf16>
    %c0_6 = arith.constant 0 : index
    %c0_7 = arith.constant 0 : index
    %10 = vector.load %arg5[%c0_6, %c0_7] : memref<128x192xbf16, #tpu.memory_space<vmem>>, vector<128x192xbf16>
    tpu.vector_store %arg5[%c0_6, %c0_7], %9 {strides = array<i32>} : memref<128x192xbf16, #tpu.memory_space<vmem>>, vector<128x192xbf16>,
    return
  }
  func.func @transform_0(%arg0: i32, %arg1: i32) -> (i32, i32) {
    %c0_i32 = arith.constant 0 : i32
    %c0_i32_0 = arith.constant 0 : i32
    return %arg0, %c0_i32 : i32, i32
  }
  func.func @transform_1(%arg0: i32, %arg1: i32) -> (i32, i32) {
    %c0_i32 = arith.constant 0 : i32
    %c0_i32_0 = arith.constant 0 : i32
    return %c0_i32, %arg1 : i32, i32
  }
  func.func @transform_2(%arg0: i32, %arg1: i32) -> (i32, i32) {
    %c0_i32 = arith.constant 0 : i32
    %c0_i32_0 = arith.constant 0 : i32
    return %c0_i32, %arg1 : i32, i32
  }
  func.func @transform_3(%arg0: i32, %arg1: i32) -> (i32, i32) {
    %c0_i32 = arith.constant 0 : i32
    return %arg0, %arg1 : i32, i32
  }
}

</mosaic_0001>

<bundles_post_ra>
// kernel: tpu_custom_call.1
= control target key start
LH: loop header
LB: loop body
LE: loop exit
PB: predicated region body
PF: predicated region fallthrough
CT: control target
= control target key end

     0   :  { %vm35_vm0 = vcmask 523264   ;;  %vm563_vm1 = vcmask 1043456   ;;  %vm564_vm2 = vcmask 523268   ;;  %s1087_s0 = inlined_call_operand.vmem [shape: f32[128,64], index: 0, kind: input, shape index: {}]   ;;  %s1088_s1 = inlined_call_operand.vmem [shape: bf16[64,192], index: 1, kind: input, shape index: {}]   ;;  %s1089_s2 = inlined_call_operand.vmem [shape: f32[1,192], index: 2, kind: input, shape index: {}]   ;;  %s1090_s3 = inlined_call_operand.vmem [shape: bf16[128,192], index: 3, kind: output, shape index: {}]  }
   0x1   :  { %v19_v0 = vld [vmem:[%s1087_s0] sm:$0xff]  ;;  %v20_v2 = vld [vmem:[%s1087_s0 + $0x8] sm:$0xff]  ;;  %v21_v8 = vld [vmem:[%s1087_s0 + $0x10] sm:$0xff] }
   0x2   :  { %v27_v1 = vld [vmem:[%s1087_s0 + $0x40] sm:$0xff]  ;;  %v36_v3 = vsel %vm35_vm0, %v19_v0, 0.0  ;;  %v28_v5 = vld [vmem:[%s1087_s0 + $0x48] sm:$0xff]  ;;  %v39_v6 = vsel %vm35_vm0, %v20_v2, 0.0  ;;  %v22_v9 = vld [vmem:[%s1087_s0 + $0x18] sm:$0xff]  ;;  %v42_v10 = vsel %vm35_vm0, %v21_v8, 0.0 }
   0x3   :  { %v60_v4 = vsel %vm35_vm0, %v27_v1, 0.0  ;;  %37 = vadd.xlane.f32.xlu0 %v36_v3  ;;  %v63_v7 = vsel %vm35_vm0, %v28_v5, 0.0  ;;  %v45_v11 = vsel %vm35_vm0, %v22_v9, 0.0  ;;  %v731_v12 = vld [vmem:[%s1087_s0 + $0x50] sm:$0xff]  ;;  %v736_v13 = vld [vmem:[%s1087_s0 + $0x58] sm:$0xff]  ;;  %v745_v16 = vld [vmem:[%s1087_s0 + $0x20] sm:$0xff] }
   0x4   :  { %61 = vadd.xlane.f32.xlu1 %v60_v4  ;;  %v66_v14 = vsel %vm35_vm0, %v731_v12, 0.0  ;;  %v69_v15 = vsel %vm35_vm0, %v736_v13, 0.0  ;;  %v750_v17 = vld [vmem:[%s1087_s0 + $0x28] sm:$0xff]  ;;  %v48_v18 = vsel %vm35_vm0, %v745_v16, 0.0  ;;  %v759_v20 = vld [vmem:[%s1087_s0 + $0x60] sm:$0xff]  ;;  %v773_v24 = vld [vmem:[%s1087_s0 + $0x30] sm:$0xff] }
   0x5   :  { %v51_v19 = vsel %vm35_vm0, %v750_v17, 0.0  ;;  %v764_v21 = vld [vmem:[%s1087_s0 + $0x68] sm:$0xff]  ;;  %v72_v22 = vsel %vm35_vm0, %v759_v20, 0.0  ;;  %v778_v25 = vld [vmem:[%s1087_s0 + $0x38] sm:$0xff]  ;;  %v54_v26 = vsel %vm35_vm0, %v773_v24, 0.0  ;;  %v787_v28 = vld [vmem:[%s1087_s0 + $0x70] sm:$0xff] }
   0x6   :  { %v75_v23 = vsel %vm35_vm0, %v764_v21, 0.0  ;;  %v57_v27 = vsel %vm35_vm0, %v778_v25, 0.0  ;;  %v792_v29 = vld [vmem:[%s1087_s0 + $0x78] sm:$0xff]  ;;  %v78_v30 = vsel %vm35_vm0, %v787_v28, 0.0  ;;  %vm973_vm3 = vmor %vm564_vm2, %vm563_vm1 }
   0x7   :  { %40 = vadd.xlane.f32.xlu0 %v39_v6  ;;  %v81_v31 = vsel %vm35_vm0, %v792_v29, 0.0 }
   0x8   :  { %64 = vadd.xlane.f32.xlu1 %v63_v7 }
   0xb   :  { %43 = vadd.xlane.f32.xlu0 %v42_v10 }
   0xc   :  { %46 = vadd.xlane.f32.xlu1 %v45_v11 }
   0xf   :  { %67 = vadd.xlane.f32.xlu0 %v66_v14 }
  0x10   :  { %70 = vadd.xlane.f32.xlu1 %v69_v15 }
  0x13   :  { %49 = vadd.xlane.f32.xlu0 %v48_v18 }
  0x14   :  { %52 = vadd.xlane.f32.xlu1 %v51_v19 }
  0x17   :  { %73 = vadd.xlane.f32.xlu0 %v72_v22 }
  0x18   :  { %76 = vadd.xlane.f32.xlu1 %v75_v23 }
  0x1b   :  { %55 = vadd.xlane.f32.xlu0 %v54_v26 }
  0x1c   :  { %58 = vadd.xlane.f32.xlu1 %v57_v27 }
  0x1f   :  { %79 = vadd.xlane.f32.xlu0 %v78_v30 }
  0x20   :  { %82 = vadd.xlane.f32.xlu1 %v81_v31 }
  0x90   :  { %v38_v32 = vpop.xlane.xlu0 %37 }
  0x91   :  { %v62_v33 = vpop.xlane.xlu1 %61  ;;  %v85_v34 = vmul.f32 0.015625, %v38_v32 }
  0x92   :  { %v93_v35 = vmul.f32 0.015625, %v62_v33 }
  0x93   :  { %v798_v36 = vsub.f32 %v19_v0, %v85_v34 }
  0x94   :  { %v800_v37 = vsub.f32 %v27_v1, %v93_v35  ;;  %v41_v38 = vpop.xlane.xlu0 %40 }
  0x95   :  { %v65_v39 = vpop.xlane.xlu1 %64  ;;  %v86_v40 = vmul.f32 0.015625, %v41_v38  ;;  %v117_v42 = vmul.f32 %v798_v36, %v798_v36 }
  0x96   :  { %v94_v41 = vmul.f32 0.015625, %v65_v39  ;;  %v125_v43 = vmul.f32 %v800_v37, %v800_v37 }
  0x97   :  { %v806_v44 = vsub.f32 %v20_v2, %v86_v40  ;;  %v133_v46 = vsel %vm35_vm0, %v117_v42, 0.0 }
  0x98   :  { %v808_v45 = vsub.f32 %v28_v5, %v94_v41  ;;  %134 = vadd.xlane.f32.xlu0 %v133_v46  ;;  %v44_v47 = vpop.xlane.xlu0 %43  ;;  %v157_v49 = vsel %vm35_vm0, %v125_v43, 0.0 }
  0x99   :  { %v47_v48 = vpop.xlane.xlu1 %46  ;;  %v87_v50 = vmul.f32 0.015625, %v44_v47  ;;  %v118_v52 = vmul.f32 %v806_v44, %v806_v44 }
  0x9a   :  { %v88_v51 = vmul.f32 0.015625, %v47_v48  ;;  %v126_v53 = vmul.f32 %v808_v45, %v808_v45 }
  0x9b   :  { %v816_v54 = vsub.f32 %v21_v8, %v87_v50  ;;  %v136_v56 = vsel %vm35_vm0, %v118_v52, 0.0 }
  0x9c   :  { %v818_v55 = vsub.f32 %v22_v9, %v88_v51  ;;  %158 = vadd.xlane.f32.xlu0 %v157_v49  ;;  %137 = vadd.xlane.f32.xlu1 %v136_v56  ;;  %v68_v57 = vpop.xlane.xlu0 %67  ;;  %v160_v59 = vsel %vm35_vm0, %v126_v53, 0.0  ;;  %v643_v53 = vld [vmem:[%s1088_s1 + $0x4] ss:$8 sps:$4 sm:$0xff]  }
  0x9d   :  { %v71_v58 = vpop.xlane.xlu1 %70  ;;  %v95_v60 = vmul.f32 0.015625, %v68_v57  ;;  %v119_v62 = vmul.f32 %v816_v54, %v816_v54  ;;  %354 = vmatprep.subr.bf16.mxu0 %v643_v53  ;;  %634 = vmatprep.subr.bf16.mxu1 %v643_v53 }
  0x9e   :  { %v96_v61 = vmul.f32 0.015625, %v71_v58  ;;  %v120_v63 = vmul.f32 %v818_v55, %v818_v55  ;;  %v271_v58 = vld [vmem:[%s1088_s1 + $0x10] sm:$0xff] }
  0x9f   :  { %v827_v0 = vsub.f32 %v731_v12, %v95_v60  ;;  %v139_v2 = vsel %vm35_vm0, %v119_v62, 0.0  ;;  %v645_v60 = vld [vmem:[%s1088_s1 + $0x14] ss:$8 sps:$4 sm:$0xff]   ;;  %v273_v62 = vld [vmem:[%s1088_s1 + $0x20] sm:$0xff] }
  0xa0   :  { %v830_v1 = vsub.f32 %v736_v13, %v96_v61  ;;  %161 = vadd.xlane.f32.xlu1 %v160_v59  ;;  %140 = vadd.xlane.f32.xlu0 %v139_v2  ;;  %v50_v3 = vpop.xlane.xlu0 %49  ;;  %v142_v5 = vsel %vm35_vm0, %v120_v63, 0.0  ;;  %v272_v59 = vld [vmem:[%s1088_s1 + $0x18] sm:$0xff]  ;;  %v274_v63 = vld [vmem:[%s1088_s1 + $0x28] sm:$0xff] }
  0xa1   :  { %v53_v4 = vpop.xlane.xlu1 %52  ;;  %v89_v6 = vmul.f32 0.015625, %v50_v3  ;;  %v127_v8 = vmul.f32 %v827_v0, %v827_v0  ;;  %v588_v61 = vcombine.low %v271_v58, %v272_v59  ;;  %v647_v2 = vld [vmem:[%s1088_s1 + $0x24] ss:$8 sps:$4 sm:$0xff]   ;;  %v590_v3 = vcombine.low %v273_v62, %v274_v63 }
  0xa2   :  { %v90_v7 = vmul.f32 0.015625, %v53_v4  ;;  %v128_v9 = vmul.f32 %v830_v1, %v830_v1  ;;  %v275_v4 = vld [vmem:[%s1088_s1 + $0x30] sm:$0xff] }
  0xa3   :  { %v839_v10 = vsub.f32 %v745_v16, %v89_v6  ;;  %v163_v12 = vsel %vm35_vm0, %v127_v8, 0.0  ;;  %v649_v6 = vld [vmem:[%s1088_s1 + $0x34] ss:$8 sps:$4 sm:$0xff]   ;;  %v683_v8 = vmov 0  }
  0xa4   :  { %v842_v11 = vsub.f32 %v750_v17, %v90_v7  ;;  %143 = vadd.xlane.f32.xlu1 %v142_v5  ;;  %164 = vadd.xlane.f32.xlu0 %v163_v12  ;;  %v74_v13 = vpop.xlane.xlu0 %73  ;;  %v166_v15 = vsel %vm35_vm0, %v128_v9, 0.0  ;;  %v276_v5 = vld [vmem:[%s1088_s1 + $0x38] sm:$0xff] }
  0xa5   :  { %v77_v14 = vpop.xlane.xlu1 %76  ;;  %v97_v18 = vmul.f32 0.015625, %v74_v13  ;;  %v121_v22 = vmul.f32 %v839_v10, %v839_v10  ;;  %v592_v7 = vcombine.low %v275_v4, %v276_v5  ;;  %386 = vmatprep.mubr.bf16.mxu0 %v683_v8  ;;  %426 = vmatprep.mubr.bf16.mxu1 %v683_v8 }
  0xa6   :  { %v98_v19 = vmul.f32 0.015625, %v77_v14  ;;  %v122_v16 = vmul.f32 %v842_v11, %v842_v11 }
  0xa7   :  { %v851_v23 = vsub.f32 %v759_v20, %v97_v18  ;;  %v145_v26 = vsel %vm35_vm0, %v121_v22, 0.0 }
  0xa8   :  { %v854_v17 = vsub.f32 %v764_v21, %v98_v19  ;;  %167 = vadd.xlane.f32.xlu1 %v166_v15  ;;  %146 = vadd.xlane.f32.xlu0 %v145_v26  ;;  %v56_v27 = vpop.xlane.xlu0 %55  ;;  %v148_v31 = vsel %vm35_vm0, %v122_v16, 0.0 }
  0xa9   :  { %v59_v30 = vpop.xlane.xlu1 %58  ;;  %v91_v32 = vmul.f32 0.015625, %v56_v27  ;;  %v129_v34 = vmul.f32 %v851_v23, %v851_v23 }
  0xaa   :  { %v92_v33 = vmul.f32 0.015625, %v59_v30  ;;  %v130_v20 = vmul.f32 %v854_v17, %v854_v17 }
  0xab   :  { %v863_v35 = vsub.f32 %v773_v24, %v91_v32  ;;  %v169_v38 = vsel %vm35_vm0, %v129_v34, 0.0 }
  0xac   :  { %v866_v21 = vsub.f32 %v778_v25, %v92_v33  ;;  %149 = vadd.xlane.f32.xlu1 %v148_v31  ;;  %170 = vadd.xlane.f32.xlu0 %v169_v38  ;;  %v80_v39 = vpop.xlane.xlu0 %79  ;;  %v172_v41 = vsel %vm35_vm0, %v130_v20, 0.0 }
  0xad   :  { %v83_v40 = vpop.xlane.xlu1 %82  ;;  %v99_v42 = vmul.f32 0.015625, %v80_v39  ;;  %v123_v46 = vmul.f32 %v863_v35, %v863_v35 }
  0xae   :  { %v100_v43 = vmul.f32 0.015625, %v83_v40  ;;  %v124_v24 = vmul.f32 %v866_v21, %v866_v21 }
  0xaf   :  { %v875_v47 = vsub.f32 %v787_v28, %v99_v42  ;;  %v151_v48 = vsel %vm35_vm0, %v123_v46, 0.0  ;;  %v269_v28 = vld [vmem:[%s1088_s1] sm:$0xff] }
  0xb0   :  { %v878_v25 = vsub.f32 %v792_v29, %v100_v43  ;;  %173 = vadd.xlane.f32.xlu1 %v172_v41  ;;  %152 = vadd.xlane.f32.xlu0 %v151_v48  ;;  %v154_v49 = vsel %vm35_vm0, %v124_v24, 0.0  ;;  %v270_v29 = vld [vmem:[%s1088_s1 + $0x8] sm:$0xff] }
  0xb1   :  { %v131_v50 = vmul.f32 %v875_v47, %v875_v47  ;;  %v586_v57 = vcombine.low %v269_v28, %v270_v29 }
  0xb2   :  { %v132_v51 = vmul.f32 %v878_v25, %v878_v25 }
  0xb3   :  { %v175_v52 = vsel %vm35_vm0, %v131_v50, 0.0  ;;  %355 = vmatpush1.bf16.msra.mxu0 %v586_v57  ;;  %638 = vmatpush1.bf16.msra.mxu1 %v586_v57 }
  0xb4   :  { %155 = vadd.xlane.f32.xlu1 %v154_v49  ;;  %176 = vadd.xlane.f32.xlu0 %v175_v52  ;;  %v178_v56 = vsel %vm35_vm0, %v132_v51, 0.0 }
  0xb5   :  { %356 = vmatprep.subr.bf16.mxu0 %v645_v60  ;;  %635 = vmatprep.subr.bf16.mxu1 %v645_v60 }
  0xb7   :  { %357 = vmatpush1.bf16.msra.mxu0 %v588_v61  ;;  %639 = vmatpush1.bf16.msra.mxu1 %v588_v61 }
  0xb8   :  { %179 = vadd.xlane.f32.xlu1 %v178_v56  ;;  %358 = vmatprep.subr.bf16.mxu0 %v647_v2 }
  0xb9   :  { %636 = vmatprep.subr.bf16.mxu1 %v647_v2 }
  0xbb   :  { %359 = vmatpush1.bf16.msra.mxu0 %v590_v3  ;;  %640 = vmatpush1.bf16.msra.mxu1 %v590_v3 }
  0xbc   :  { %360 = vmatprep.subr.bf16.mxu0 %v649_v6  ;;  %637 = vmatprep.subr.bf16.mxu1 %v649_v6 }
  0xbf   :  { %361 = vmatpush1.bf16.msra.mxu0 %v592_v7  ;;  %641 = vmatpush1.bf16.msra.mxu1 %v592_v7 }
 0x125   :  { %v135_v9 = vpop.xlane.xlu0 %134 }
 0x126   :  { %v181_v12 = vmul.f32 0.015625, %v135_v9 }
 0x128   :  { %v197_v13 = vadd.f32 1e-05, %v181_v12 }
 0x129   :  { %v138_v14 = vpop.xlane.xlu1 %137  ;;  %v159_v15 = vpop.xlane.xlu0 %158 }
 0x12a   :  { %v182_v18 = vmul.f32 0.015625, %v138_v14  ;;  %v189_v19 = vmul.f32 0.015625, %v159_v15  ;;  %651 = vrsqrt.f32 %v197_v13 }
 0x12c   :  { %v198_v22 = vadd.f32 1e-05, %v182_v18  ;;  %v205_v16 = vadd.f32 1e-05, %v189_v19 }
 0x12d   :  { %v162_v26 = vpop.xlane.xlu1 %161  ;;  %v141_v27 = vpop.xlane.xlu0 %140 }
 0x12e   :  { %653 = vrsqrt.f32 %v198_v22  ;;  %v190_v30 = vmul.f32 0.015625, %v162_v26  ;;  %v183_v31 = vmul.f32 0.015625, %v141_v27 }
 0x12f   :  { %655 = vrsqrt.f32 %v205_v16 }
 0x130   :  { %v206_v32 = vadd.f32 1e-05, %v190_v30  ;;  %v199_v33 = vadd.f32 1e-05, %v183_v31 }
 0x131   :  { %v144_v34 = vpop.xlane.xlu1 %143  ;;  %v165_v20 = vpop.xlane.xlu0 %164 }
 0x132   :  { %657 = vrsqrt.f32 %v206_v32  ;;  %v184_v38 = vmul.f32 0.015625, %v144_v34  ;;  %v191_v39 = vmul.f32 0.015625, %v165_v20 }
 0x133   :  { %659 = vrsqrt.f32 %v199_v33 }
 0x134   :  { %v200_v40 = vadd.f32 1e-05, %v184_v38  ;;  %v207_v41 = vadd.f32 1e-05, %v191_v39  ;;  %v652_v46 = vpop.eup %651 }
 0x135   :  { %v168_v42 = vpop.xlane.xlu1 %167  ;;  %v147_v43 = vpop.xlane.xlu0 %146  ;;  %v229_v52 = vmul.f32 %v652_v46, %v798_v36 }
 0x136   :  { %661 = vrsqrt.f32 %v200_v40  ;;  %v192_v24 = vmul.f32 0.015625, %v168_v42  ;;  %v185_v48 = vmul.f32 0.015625, %v147_v43 }
 0x137   :  { %663 = vrsqrt.f32 %v207_v41 }
 0x138   :  { %v654_v49 = vpop.eup %653  ;;  %v208_v50 = vadd.f32 1e-05, %v192_v24  ;;  %v201_v51 = vadd.f32 1e-05, %v185_v48 }
 0x139   :  { %v230_v28 = vmul.f32 %v654_v49, %v806_v44  ;;  %v150_v29 = vpop.xlane.xlu1 %149  ;;  %v171_v53 = vpop.xlane.xlu0 %170 }
 0x13a   :  { %v656_v56 = vpop.eup %655  ;;  %665 = vrsqrt.f32 %v208_v50  ;;  %v186_v57 = vmul.f32 0.015625, %v150_v29  ;;  %v193_v58 = vmul.f32 0.015625, %v171_v53 }
 0x13b   :  { %v245_v59 = vpack.c.bf16 %v230_v28, %v229_v52  ;;  %667 = vrsqrt.f32 %v201_v51  ;;  %v237_v63 = vmul.f32 %v656_v56, %v800_v37 }
 0x13c   :  { %v658_v60 = vpop.eup %657  ;;  %v202_v61 = vadd.f32 1e-05, %v186_v57  ;;  %v209_v62 = vadd.f32 1e-05, %v193_v58 }
 0x13d   :  { %253 = vst.msk [vmem:[#allocation2] sm:$0xff] %vm35_vm0, %v245_v59  ;;  %v238_v2 = vmul.f32 %v658_v60, %v808_v45  ;;  %v174_v36 = vpop.xlane.xlu1 %173  ;;  %v153_v3 = vpop.xlane.xlu0 %152  ;;  %v277_v59 = vld [vmem:[%s1089_s2] sm:$0x3] }
 0x13e   :  { %v660_v44 = vpop.eup %659  ;;  %669 = vrsqrt.f32 %v202_v61  ;;  %v194_v4 = vmul.f32 0.015625, %v174_v36  ;;  %v187_v5 = vmul.f32 0.015625, %v153_v3 }
 0x13f   :  { %v249_v6 = vpack.c.bf16 %v238_v2, %v237_v63  ;;  %671 = vrsqrt.f32 %v209_v62  ;;  %v231_v13 = vmul.f32 %v660_v44, %v816_v54 }
 0x140   :  { %v662_v7 = vpop.eup %661  ;;  %v210_v9 = vadd.f32 1e-05, %v194_v4  ;;  %v203_v12 = vadd.f32 1e-05, %v187_v5 }
 0x141   :  { %257 = vst.msk [vmem:[#allocation2 + $0x20] sm:$0xff] %vm35_vm0, %v249_v6  ;;  %v232_v14 = vmul.f32 %v662_v7, %v818_v55  ;;  %v156_v37 = vpop.xlane.xlu1 %155  ;;  %v177_v15 = vpop.xlane.xlu0 %176 }
 0x142   :  { %v664_v45 = vpop.eup %663  ;;  %673 = vrsqrt.f32 %v210_v9  ;;  %v188_v18 = vmul.f32 0.015625, %v156_v37  ;;  %v195_v19 = vmul.f32 0.015625, %v177_v15 }
 0x143   :  { %v246_v22 = vpack.c.bf16 %v232_v14, %v231_v13  ;;  %675 = vrsqrt.f32 %v203_v12  ;;  %v239_v31 = vmul.f32 %v664_v45, %v827_v0 }
 0x144   :  { %v666_v16 = vpop.eup %665  ;;  %v204_v26 = vadd.f32 1e-05, %v188_v18  ;;  %v211_v27 = vadd.f32 1e-05, %v195_v19  ;;  %v261_v30 = vld [vmem:[#allocation2] sm:$0xff] }
 0x145   :  { %254 = vst.msk [vmem:[#allocation2 + $0x8] sm:$0xff] %vm35_vm0, %v246_v22  ;;  %v240_v54 = vmul.f32 %v666_v16, %v830_v1  ;;  %v180_v32 = vpop.xlane.xlu1 %179  ;;  %594 = vmatmul.mubr.msk.bf16.vlgmr.msra.gmra.mrb[0].mxu0 %vm35_vm0, %v261_v30  ;;  %v668_v55 = vpop.eup %667 }
 0x146   :  { %677 = vrsqrt.f32 %v204_v26  ;;  %v196_v33 = vmul.f32 0.015625, %v180_v32  ;;  %396 = vmatprep.mubr.bf16.mxu0 %v683_v8  ;;  %v233_v40 = vmul.f32 %v668_v55, %v839_v10 }
 0x147   :  { %v250_v34 = vpack.c.bf16 %v240_v54, %v239_v31  ;;  %679 = vrsqrt.f32 %v211_v27 }
 0x148   :  { %v670_v20 = vpop.eup %669  ;;  %v212_v38 = vadd.f32 1e-05, %v196_v33  ;;  %v265_v39 = vld [vmem:[#allocation2 + $0x20] sm:$0xff] }
 0x149   :  { %258 = vst.msk [vmem:[#allocation2 + $0x28] sm:$0xff] %vm35_vm0, %v250_v34  ;;  %v234_v0 = vmul.f32 %v670_v20, %v842_v11  ;;  %598 = vmatmul.mubr.msk.bf16.vlgmr.msra.gmra.mrb[0].mxu1 %vm35_vm0, %v265_v39  ;;  %v672_v1 = vpop.eup %671 }
 0x14a   :  { %681 = vrsqrt.f32 %v212_v38  ;;  %436 = vmatprep.mubr.bf16.mxu1 %v683_v8  ;;  %v241_v46 = vmul.f32 %v672_v1, %v851_v23 }
 0x14b   :  { %v247_v41 = vpack.c.bf16 %v234_v0, %v233_v40 }
 0x14c   :  { %v674_v42 = vpop.eup %673  ;;  %v262_v43 = vld [vmem:[#allocation2 + $0x8] sm:$0xff] }
 0x14d   :  { %255 = vst.msk [vmem:[#allocation2 + $0x10] sm:$0xff] %vm35_vm0, %v247_v41  ;;  %v242_v24 = vmul.f32 %v674_v42, %v854_v17  ;;  %595 = vmatmul.mubr.msk.bf16.gmra.mrb[4].mxu0 %vm35_vm0, %v262_v43  ;;  %v676_v10 = vpop.eup %675 }
 0x14e   :  { %406 = vmatprep.mubr.bf16.mxu0 %v683_v8  ;;  %v235_v50 = vmul.f32 %v676_v10, %v863_v35 }
 0x14f   :  { %v251_v11 = vpack.c.bf16 %v242_v24, %v241_v46 }
 0x150   :  { %v678_v48 = vpop.eup %677  ;;  %v266_v49 = vld [vmem:[#allocation2 + $0x28] sm:$0xff] }
 0x151   :  { %259 = vst.msk [vmem:[#allocation2 + $0x30] sm:$0xff] %vm35_vm0, %v251_v11  ;;  %v236_v51 = vmul.f32 %v678_v48, %v866_v21  ;;  %599 = vmatmul.mubr.msk.bf16.gmra.mrb[4].mxu1 %vm35_vm0, %v266_v49  ;;  %v680_v52 = vpop.eup %679 }
 0x152   :  { %446 = vmatprep.mubr.bf16.mxu1 %v683_v8  ;;  %v243_v29 = vmul.f32 %v680_v52, %v875_v47  ;;  %v279_v47 = vlaneseq }
 0x153   :  { %v248_v23 = vpack.c.bf16 %v236_v51, %v235_v50 }
 0x154   :  { %v682_v17 = vpop.eup %681  ;;  %v263_v28 = vld [vmem:[#allocation2 + $0x10] sm:$0xff] }
 0x155   :  { %256 = vst.msk [vmem:[#allocation2 + $0x18] sm:$0xff] %vm35_vm0, %v248_v23  ;;  %v244_v53 = vmul.f32 %v682_v17, %v878_v25  ;;  %596 = vmatmul.mubr.msk.bf16.gmra.mrb[8].mxu0 %vm35_vm0, %v263_v28  ;;  %v280_v25 = vshrl.u32 %v279_v47, 7 }
 0x156   :  { %416 = vmatprep.mubr.bf16.mxu0 %v683_v8 }
 0x157   :  { %v252_v35 = vpack.c.bf16 %v244_v53, %v243_v29  ;;  %v281_v58 = vsub.s32 0, %v280_v25  ;;  %v285_v60 = vsub.s32 1, %v280_v25 }
 0x158   :  { %v267_v21 = vld [vmem:[#allocation2 + $0x30] sm:$0xff] }
 0x159   :  { %260 = vst.msk [vmem:[#allocation2 + $0x38] sm:$0xff] %vm35_vm0, %v252_v35  ;;  %600 = vmatmul.mubr.msk.bf16.gmra.mrb[8].mxu1 %vm35_vm0, %v267_v21  ;;  %v967_v61 = vrot.slane %v277_v59, %v281_v58  ;;  %v969_v62 = vrot.slane %v277_v59, %v285_v60 }
 0x15a   :  { %456 = vmatprep.mubr.bf16.mxu1 %v683_v8 }
 0x15c   :  { %v264_v56 = vld [vmem:[#allocation2 + $0x18] sm:$0xff] }
 0x15d   :  { %597 = vmatmul.mubr.msk.bf16.gmra.mrb[12].mxu0 %vm35_vm0, %v264_v56 }
 0x160   :  { %v268_v57 = vld [vmem:[#allocation2 + $0x38] sm:$0xff] }
 0x161   :  { %601 = vmatmul.mubr.msk.bf16.gmra.mrb[12].mxu1 %vm35_vm0, %v268_v57 }
 0x218   :  { %v388_v63 = vpop.f32.mrb[0].mxu0 }
 0x219   :  { %v389_v8 = vadd.f32 %v388_v63, %v967_v61  ;;  %v390_v2 = vpop.f32.mrb[1].mxu0 }
 0x21a   :  { %v391_v36 = vadd.f32 %v390_v2, %v969_v62  ;;  %v392_v3 = vpop.f32.mrb[2].mxu0 }
 0x21b   :  { %v393_v4 = vadd.f32 %v392_v3, %v967_v61  ;;  %v394_v5 = vpop.f32.mrb[3].mxu0 }
 0x21c   :  { %v618_v6 = vpack.c.bf16 %v391_v36, %v389_v8  ;;  %v395_v7 = vadd.f32 %v394_v5, %v969_v62  ;;  %v428_v9 = vpop.f32.mrb[0].mxu1 }
 0x21d   :  { %v429_v12 = vadd.f32 %v428_v9, %v967_v61  ;;  %v430_v13 = vpop.f32.mrb[1].mxu1 }
 0x21e   :  { %566 = vst.msk [vmem:[%s1090_s3] sm:$0xff] %vm973_vm3, %v618_v6  ;;  %v619_v14 = vpack.c.bf16 %v395_v7, %v393_v4  ;;  %v431_v37 = vadd.f32 %v430_v13, %v969_v62  ;;  %v432_v15 = vpop.f32.mrb[2].mxu1 }
 0x21f   :  { %v433_v45 = vadd.f32 %v432_v15, %v967_v61  ;;  %v434_v18 = vpop.f32.mrb[3].mxu1 }
 0x220   :  { %567 = vst.msk [vmem:[%s1090_s3 + $0x8] sm:$0xff] %vm973_vm3, %v619_v14  ;;  %v626_v19 = vpack.c.bf16 %v431_v37, %v429_v12  ;;  %v435_v22 = vadd.f32 %v434_v18, %v969_v62  ;;  %v398_v16 = vpop.f32.mrb[4].mxu0 }
 0x221   :  { %v399_v26 = vadd.f32 %v398_v16, %v967_v61  ;;  %v400_v27 = vpop.f32.mrb[5].mxu0 }
 0x222   :  { %574 = vst.msk [vmem:[%s1090_s3 + $0x40] sm:$0xff] %vm973_vm3, %v626_v19  ;;  %v627_v30 = vpack.c.bf16 %v435_v22, %v433_v45  ;;  %v401_v31 = vadd.f32 %v400_v27, %v969_v62  ;;  %v402_v54 = vpop.f32.mrb[6].mxu0 }
 0x223   :  { %v403_v32 = vadd.f32 %v402_v54, %v967_v61  ;;  %v404_v55 = vpop.f32.mrb[7].mxu0 }
 0x224   :  { %575 = vst.msk [vmem:[%s1090_s3 + $0x48] sm:$0xff] %vm973_vm3, %v627_v30  ;;  %v620_v33 = vpack.c.bf16 %v401_v31, %v399_v26  ;;  %v405_v34 = vadd.f32 %v404_v55, %v969_v62  ;;  %v438_v20 = vpop.f32.mrb[4].mxu1 }
 0x225   :  { %v439_v38 = vadd.f32 %v438_v20, %v967_v61  ;;  %v440_v39 = vpop.f32.mrb[5].mxu1 }
 0x226   :  { %568 = vst.msk [vmem:[%s1090_s3 + $0x10] sm:$0xff] %vm973_vm3, %v620_v33  ;;  %v621_v40 = vpack.c.bf16 %v405_v34, %v403_v32  ;;  %v441_v0 = vadd.f32 %v440_v39, %v969_v62  ;;  %v442_v1 = vpop.f32.mrb[6].mxu1 }
 0x227   :  { %v443_v41 = vadd.f32 %v442_v1, %v967_v61  ;;  %v444_v42 = vpop.f32.mrb[7].mxu1 }
 0x228   :  { %569 = vst.msk [vmem:[%s1090_s3 + $0x18] sm:$0xff] %vm973_vm3, %v621_v40  ;;  %v628_v43 = vpack.c.bf16 %v441_v0, %v439_v38  ;;  %v445_v46 = vadd.f32 %v444_v42, %v969_v62  ;;  %v408_v24 = vpop.f32.mrb[8].mxu0 }
 0x229   :  { %v409_v10 = vadd.f32 %v408_v24, %v967_v61  ;;  %v410_v11 = vpop.f32.mrb[9].mxu0 }
 0x22a   :  { %576 = vst.msk [vmem:[%s1090_s3 + $0x50] sm:$0xff] %vm973_vm3, %v628_v43  ;;  %v629_v48 = vpack.c.bf16 %v445_v46, %v443_v41  ;;  %v411_v49 = vadd.f32 %v410_v11, %v969_v62  ;;  %v412_v50 = vpop.f32.mrb[10].mxu0 }
 0x22b   :  { %v413_v51 = vadd.f32 %v412_v50, %v967_v61  ;;  %v414_v52 = vpop.f32.mrb[11].mxu0 }
 0x22c   :  { %577 = vst.msk [vmem:[%s1090_s3 + $0x58] sm:$0xff] %vm973_vm3, %v629_v48  ;;  %v622_v23 = vpack.c.bf16 %v411_v49, %v409_v10  ;;  %v415_v17 = vadd.f32 %v414_v52, %v969_v62  ;;  %v448_v28 = vpop.f32.mrb[8].mxu1 }
 0x22d   :  { %v449_v29 = vadd.f32 %v448_v28, %v967_v61  ;;  %v450_v53 = vpop.f32.mrb[9].mxu1 }
 0x22e   :  { %570 = vst.msk [vmem:[%s1090_s3 + $0x20] sm:$0xff] %vm973_vm3, %v622_v23  ;;  %v623_v35 = vpack.c.bf16 %v415_v17, %v413_v51  ;;  %v451_v21 = vadd.f32 %v450_v53, %v969_v62  ;;  %v452_v56 = vpop.f32.mrb[10].mxu1 }
 0x22f   :  { %v453_v57 = vadd.f32 %v452_v56, %v967_v61  ;;  %v454_v47 = vpop.f32.mrb[11].mxu1 }
 0x230   :  { %571 = vst.msk [vmem:[%s1090_s3 + $0x28] sm:$0xff] %vm973_vm3, %v623_v35  ;;  %v630_v25 = vpack.c.bf16 %v451_v21, %v449_v29  ;;  %v455_v58 = vadd.f32 %v454_v47, %v969_v62  ;;  %v418_v59 = vpop.f32.mrb[12].mxu0 }
 0x231   :  { %v419_v60 = vadd.f32 %v418_v59, %v967_v61  ;;  %v420_v63 = vpop.f32.mrb[13].mxu0 }
 0x232   :  { %578 = vst.msk [vmem:[%s1090_s3 + $0x60] sm:$0xff] %vm973_vm3, %v630_v25  ;;  %v631_v8 = vpack.c.bf16 %v455_v58, %v453_v57  ;;  %v421_v2 = vadd.f32 %v420_v63, %v969_v62  ;;  %v422_v36 = vpop.f32.mrb[14].mxu0 }
 0x233   :  { %v423_v3 = vadd.f32 %v422_v36, %v967_v61  ;;  %v424_v4 = vpop.f32.mrb[15].mxu0 }
 0x234   :  { %579 = vst.msk [vmem:[%s1090_s3 + $0x68] sm:$0xff] %vm973_vm3, %v631_v8  ;;  %v624_v5 = vpack.c.bf16 %v421_v2, %v419_v60  ;;  %v425_v6 = vadd.f32 %v424_v4, %v969_v62  ;;  %v458_v7 = vpop.f32.mrb[12].mxu1 }
 0x235   :  { %v459_v9 = vadd.f32 %v458_v7, %v967_v61  ;;  %v460_v12 = vpop.f32.mrb[13].mxu1 }
 0x236   :  { %572 = vst.msk [vmem:[%s1090_s3 + $0x30] sm:$0xff] %vm973_vm3, %v624_v5  ;;  %v625_v13 = vpack.c.bf16 %v425_v6, %v423_v3  ;;  %v461_v14 = vadd.f32 %v460_v12, %v969_v62  ;;  %v462_v37 = vpop.f32.mrb[14].mxu1 }
 0x237   :  { %v463_v15 = vadd.f32 %v462_v37, %v967_v61  ;;  %v464_v45 = vpop.f32.mrb[15].mxu1 }
 0x238   :  { %573 = vst.msk [vmem:[%s1090_s3 + $0x38] sm:$0xff] %vm973_vm3, %v625_v13  ;;  %v632_v18 = vpack.c.bf16 %v461_v14, %v459_v9  ;;  %v465_v19 = vadd.f32 %v464_v45, %v969_v62 }
 0x23a   :  { %580 = vst.msk [vmem:[%s1090_s3 + $0x70] sm:$0xff] %vm973_vm3, %v632_v18  ;;  %v633_v22 = vpack.c.bf16 %v465_v19, %v463_v15 }
 0x23c   :  { %581 = vst.msk [vmem:[%s1090_s3 + $0x78] sm:$0xff] %vm973_vm3, %v633_v22 }

</bundles_post_ra>
